<compile_context>
chip_gen: v7x
topology: tpu7x:2x2x1
jax: 0.10.0
libtpu: 0.0.40
codegen_flags: <defaults>
</compile_context>

<pallas_src>
import math
import functools

import numpy as np
import jax
import jax.numpy as jnp
from jax import lax
from jax.experimental import pallas as pl
from jax.experimental.pallas import tpu as pltpu  # noqa: F401  (TPU backend)

BATCH = 8
DIM = 16       # z feature dimension (z_shape = (DIM,))
HIDDEN = 32    # MLP hidden width
H_MAX = 0.1    # Euler solver max step (matches ode_solve_euler default)
UNROLL_LIMIT = 128   # fully unroll the trace if total Euler steps <= this


def _node_kernel(z0_ref, w1_ref, b1_ref, wt_ref, w2_ref, b2_ref, out_ref,
                 *, segments, unrolled):
    """Single invocation (no grid): integrates every time segment.

    segments: static tuple of (t0, h, n_steps) per segment (host constants).
    z0_ref : VMEM (BATCH, DIM) f32
    w1_ref : VMEM (DIM, HIDDEN) bf16     b1_ref/wt_ref : VMEM (1, HIDDEN) f32
    w2_ref : VMEM (HIDDEN, DIM) bf16     b2_ref        : VMEM (1, DIM) f32
    out_ref: VMEM (n_seg, BATCH, DIM)    trajectory at each segment end
    """
    w1 = w1_ref[...]                                      # loaded once, resident
    w2 = w2_ref[...]
    b1 = b1_ref[...]
    wt = wt_ref[...]
    b2b = jnp.broadcast_to(b2_ref[...], (BATCH, DIM))     # hoisted broadcast

    def euler_step(z, bias, h):
        # bias has no z dependency -> scheduler hides it under the serial
        # dot -> tanh -> dot chain.
        pre = jnp.dot(z.astype(jnp.bfloat16), w1,
                      preferred_element_type=jnp.float32) + bias
        hid = jnp.tanh(pre)
        f = jnp.dot(hid.astype(jnp.bfloat16), w2,
                    preferred_element_type=jnp.float32) + b2b
        return z + h * f

    z = z0_ref[...].astype(jnp.float32)

    if unrolled:
        # Exact per-segment trip counts baked at trace time: no step masking,
        # no wasted Euler iterations, no scalar tables.  All time biases are
        # computed ahead of the z chain (pure side-chain VPU work).
        for i, (t0, h, n_steps) in enumerate(segments):
            biases = [
                jnp.broadcast_to(b1 + (t0 + k * h) * wt, (BATCH, HIDDEN))
                for k in range(n_steps)
            ]
            for k in range(n_steps):
                z = euler_step(z, biases[k], h)
            out_ref[i] = z.astype(out_ref.dtype)
    else:
        # Fallback for very long integrations: exact trip counts still baked
        # (one fori_loop per segment), bias recomputed per step on the side
        # chain from t_k = t0 + k*h (no accumulated drift).
        for i, (t0, h, n_steps) in enumerate(segments):
            def body(k, z, t0=t0, h=h):
                t_k = t0 + k.astype(jnp.float32) * h
                bias = jnp.broadcast_to(b1 + t_k * wt, (BATCH, HIDDEN))
                return euler_step(z, bias, h)
            z = lax.fori_loop(0, n_steps, body, z, unroll=min(8, n_steps))
            out_ref[i] = z.astype(out_ref.dtype)


def neural_ode_forward(z0, params, t=None, return_whole_sequence=False):
    """Mirrors NeuralODE.forward / ODEAdjoint.forward semantics.

    z0: (BATCH, DIM) float32; t: host-side 1-D array of time points.
    All (time_len - 1) Euler integrations run inside one grid-less pallas_call.
    """
    if t is None:
        t = np.array([0.0, 1.0], dtype=np.float32)
    t = np.asarray(t, dtype=np.float32)
    time_len = int(t.shape[0])
    if time_len < 2:
        return z0[None] if return_whole_sequence else z0

    n_seg = time_len - 1
    segments = []
    total_steps = 0
    for i in range(n_seg):
        a, b = float(t[i]), float(t[i + 1])
        n_steps = max(int(math.ceil(abs(b - a) / H_MAX)), 1)
        h = (b - a) / n_steps
        segments.append((a, h, n_steps))
        total_steps += n_steps
    segments = tuple(segments)
    unrolled = total_steps <= UNROLL_LIMIT

    w1, b1, wt, w2, b2 = params
    # bf16 MXU operands (native on v5e/v6e/v7x); accumulation stays f32.
    w1_bf = w1.astype(jnp.bfloat16)
    w2_bf = w2.astype(jnp.bfloat16)

    # No grid, no BlockSpecs: every operand is a full-extent VMEM block and
    # the whole trajectory is written back to HBM as one contiguous DMA.
    traj = pl.pallas_call(
        functools.partial(_node_kernel, segments=segments, unrolled=unrolled),
        out_shape=jax.ShapeDtypeStruct((n_seg, BATCH, DIM), z0.dtype),
    )(z0, w1_bf, b1, wt, w2_bf, b2)

    if return_whole_sequence:
        return jnp.concatenate([z0[None].astype(traj.dtype), traj], axis=0)
    return traj[-1]


def init_params(key):
    """Deterministic nn.Linear-style init for the MLP dynamics f(z, t)."""
    k1, k2, k3, k4, k5 = jax.random.split(key, 5)
    s1 = 1.0 / math.sqrt(DIM)
    s2 = 1.0 / math.sqrt(HIDDEN)
    w1 = jax.random.uniform(k1, (DIM, HIDDEN), jnp.float32, -s1, s1)
    b1 = jax.random.uniform(k2, (1, HIDDEN), jnp.float32, -s1, s1)
    wt = jax.random.uniform(k3, (1, HIDDEN), jnp.float32, -s1, s1)
    w2 = jax.random.uniform(k4, (HIDDEN, DIM), jnp.float32, -s2, s2)
    b2 = jax.random.uniform(k5, (1, DIM), jnp.float32, -s2, s2)
    return (w1, b1, wt, w2, b2)


def _reference_trajectory(z0, params, t, bf16_matmuls):
    """Pure-JAX reference (no Pallas). Returns the full (time_len,B,D) path."""
    w1, b1, wt, w2, b2 = params
    if bf16_matmuls:
        w1 = w1.astype(jnp.bfloat16)
        w2 = w2.astype(jnp.bfloat16)
    t = np.asarray(t, dtype=np.float32)
    z = z0.astype(jnp.float32)
    path = [z]
    for i in range(t.shape[0] - 1):
        a, b = float(t[i]), float(t[i + 1])
        n_steps = max(int(math.ceil(abs(b - a) / H_MAX)), 1)
        h = (b - a) / n_steps
        for k in range(n_steps):
            t_k = a + k * h
            zi = z.astype(jnp.bfloat16) if bf16_matmuls else z
            pre = jnp.dot(zi, w1, preferred_element_type=jnp.float32) \
                + b1 + t_k * wt
            hid = jnp.tanh(pre)
            hi = hid.astype(jnp.bfloat16) if bf16_matmuls else hid
            f = jnp.dot(hi, w2, preferred_element_type=jnp.float32) + b2
            z = z + h * f
        path.append(z)
    return jnp.stack(path, axis=0)


if __name__ == "__main__":
    key = jax.random.PRNGKey(0)
    k_params, k_z0 = jax.random.split(key)

    params = init_params(k_params)
    z0 = jax.random.normal(k_z0, (BATCH, DIM), dtype=jnp.float32)

    # --- default t = [0, 1], return z[-1] ---------------------------------
    t_default = np.array([0.0, 1.0], dtype=np.float32)
    out = jax.block_until_ready(
        neural_ode_forward(z0, params, t_default, return_whole_sequence=False))
    assert out.shape == (BATCH, DIM)

    ref_bf16 = jax.block_until_ready(
        _reference_trajectory(z0, params, t_default, bf16_matmuls=True))[-1]
    ref_f32 = jax.block_until_ready(
        _reference_trajectory(z0, params, t_default, bf16_matmuls=False))[-1]
    assert np.allclose(np.asarray(out), np.asarray(ref_bf16),
                       atol=2e-3, rtol=2e-3)          # same bf16 math
    assert np.allclose(np.asarray(out), np.asarray(ref_f32),
                       atol=5e-2, rtol=5e-2)          # vs full-f32 semantics

    # --- multi-segment t with unequal n_steps, whole sequence -------------
    t_multi = np.array([0.0, 0.35, 1.0], dtype=np.float32)
    seq = jax.block_until_ready(
        neural_ode_forward(z0, params, t_multi, return_whole_sequence=True))
    assert seq.shape == (3, BATCH, DIM)
    ref_seq = jax.block_until_ready(
        _reference_trajectory(z0, params, t_multi, bf16_matmuls=True))
    assert np.allclose(np.asarray(seq), np.asarray(ref_seq),
                       atol=2e-3, rtol=2e-3)

    # TODO(synk): ODEAdjoint.backward (adjoint-sensitivity gradient pass) is
    # autograd machinery, not part of the forward semantics, so it is omitted.
    print("KERNEL_OK")
</pallas_src>

<mosaic_0001>
module attributes {stable_mosaic.version = 11 : i64} {
  func.func @_node_kernel(%arg0: memref<8x16xf32, #tpu.memory_space<vmem>>, %arg1: memref<16x32xbf16, #tpu.memory_space<vmem>>, %arg2: memref<1x32xf32, #tpu.memory_space<vmem>>, %arg3: memref<1x32xf32, #tpu.memory_space<vmem>>, %arg4: memref<32x16xbf16, #tpu.memory_space<vmem>>, %arg5: memref<1x16xf32, #tpu.memory_space<vmem>>, %arg6: memref<1x8x16xf32, #tpu.memory_space<vmem>>) attributes {dimension_semantics = [], scalar_prefetch = 0 : i64, scratch_operands = 0 : i64, tpu.core_type = #tpu.core_type<tc>} {
    %c0 = arith.constant 0 : index
    %c0_0 = arith.constant 0 : index
    %0 = vector.load %arg1[%c0, %c0_0] : memref<16x32xbf16, #tpu.memory_space<vmem>>, vector<16x32xbf16>
    %c0_1 = arith.constant 0 : index
    %c0_2 = arith.constant 0 : index
    %1 = vector.load %arg4[%c0_1, %c0_2] : memref<32x16xbf16, #tpu.memory_space<vmem>>, vector<32x16xbf16>
    %c0_3 = arith.constant 0 : index
    %c0_4 = arith.constant 0 : index
    %2 = vector.load %arg2[%c0_3, %c0_4] : memref<1x32xf32, #tpu.memory_space<vmem>>, vector<1x32xf32>
    %c0_5 = arith.constant 0 : index
    %c0_6 = arith.constant 0 : index
    %3 = vector.load %arg3[%c0_5, %c0_6] : memref<1x32xf32, #tpu.memory_space<vmem>>, vector<1x32xf32>
    %c0_7 = arith.constant 0 : index
    %c0_8 = arith.constant 0 : index
    %4 = vector.load %arg5[%c0_7, %c0_8] : memref<1x16xf32, #tpu.memory_space<vmem>>, vector<1x16xf32>
    %5 = vector.shape_cast %4 : vector<1x16xf32> to vector<1x16xf32>
    %6 = vector.broadcast %5 : vector<1x16xf32> to vector<8x16xf32>
    %c0_9 = arith.constant 0 : index
    %c0_10 = arith.constant 0 : index
    %7 = vector.load %arg0[%c0_9, %c0_10] : memref<8x16xf32, #tpu.memory_space<vmem>>, vector<8x16xf32>
    %cst = arith.constant 0.000000e+00 : f32
    %8 = vector.broadcast %cst : f32 to vector<1x32xf32>
    %9 = arith.mulf %8, %3 : vector<1x32xf32>
    %10 = arith.addf %2, %9 : vector<1x32xf32>
    %11 = vector.shape_cast %10 : vector<1x32xf32> to vector<1x32xf32>
    %12 = vector.broadcast %11 : vector<1x32xf32> to vector<8x32xf32>
    %cst_11 = arith.constant 1.000000e-01 : f32
    %13 = vector.broadcast %cst_11 : f32 to vector<1x32xf32>
    %14 = arith.mulf %13, %3 : vector<1x32xf32>
    %15 = arith.addf %2, %14 : vector<1x32xf32>
    %16 = vector.shape_cast %15 : vector<1x32xf32> to vector<1x32xf32>
    %17 = vector.broadcast %16 : vector<1x32xf32> to vector<8x32xf32>
    %cst_12 = arith.constant 2.000000e-01 : f32
    %18 = vector.broadcast %cst_12 : f32 to vector<1x32xf32>
    %19 = arith.mulf %18, %3 : vector<1x32xf32>
    %20 = arith.addf %2, %19 : vector<1x32xf32>
    %21 = vector.shape_cast %20 : vector<1x32xf32> to vector<1x32xf32>
    %22 = vector.broadcast %21 : vector<1x32xf32> to vector<8x32xf32>
    %cst_13 = arith.constant 3.000000e-01 : f32
    %23 = vector.broadcast %cst_13 : f32 to vector<1x32xf32>
    %24 = arith.mulf %23, %3 : vector<1x32xf32>
    %25 = arith.addf %2, %24 : vector<1x32xf32>
    %26 = vector.shape_cast %25 : vector<1x32xf32> to vector<1x32xf32>
    %27 = vector.broadcast %26 : vector<1x32xf32> to vector<8x32xf32>
    %cst_14 = arith.constant 4.000000e-01 : f32
    %28 = vector.broadcast %cst_14 : f32 to vector<1x32xf32>
    %29 = arith.mulf %28, %3 : vector<1x32xf32>
    %30 = arith.addf %2, %29 : vector<1x32xf32>
    %31 = vector.shape_cast %30 : vector<1x32xf32> to vector<1x32xf32>
    %32 = vector.broadcast %31 : vector<1x32xf32> to vector<8x32xf32>
    %cst_15 = arith.constant 5.000000e-01 : f32
    %33 = vector.broadcast %cst_15 : f32 to vector<1x32xf32>
    %34 = arith.mulf %33, %3 : vector<1x32xf32>
    %35 = arith.addf %2, %34 : vector<1x32xf32>
    %36 = vector.shape_cast %35 : vector<1x32xf32> to vector<1x32xf32>
    %37 = vector.broadcast %36 : vector<1x32xf32> to vector<8x32xf32>
    %cst_16 = arith.constant 6.000000e-01 : f32
    %38 = vector.broadcast %cst_16 : f32 to vector<1x32xf32>
    %39 = arith.mulf %38, %3 : vector<1x32xf32>
    %40 = arith.addf %2, %39 : vector<1x32xf32>
    %41 = vector.shape_cast %40 : vector<1x32xf32> to vector<1x32xf32>
    %42 = vector.broadcast %41 : vector<1x32xf32> to vector<8x32xf32>
    %cst_17 = arith.constant 0.699999988 : f32
    %43 = vector.broadcast %cst_17 : f32 to vector<1x32xf32>
    %44 = arith.mulf %43, %3 : vector<1x32xf32>
    %45 = arith.addf %2, %44 : vector<1x32xf32>
    %46 = vector.shape_cast %45 : vector<1x32xf32> to vector<1x32xf32>
    %47 = vector.broadcast %46 : vector<1x32xf32> to vector<8x32xf32>
    %cst_18 = arith.constant 8.000000e-01 : f32
    %48 = vector.broadcast %cst_18 : f32 to vector<1x32xf32>
    %49 = arith.mulf %48, %3 : vector<1x32xf32>
    %50 = arith.addf %2, %49 : vector<1x32xf32>
    %51 = vector.shape_cast %50 : vector<1x32xf32> to vector<1x32xf32>
    %52 = vector.broadcast %51 : vector<1x32xf32> to vector<8x32xf32>
    %cst_19 = arith.constant 0.899999976 : f32
    %53 = vector.broadcast %cst_19 : f32 to vector<1x32xf32>
    %54 = arith.mulf %53, %3 : vector<1x32xf32>
    %55 = arith.addf %2, %54 : vector<1x32xf32>
    %56 = vector.shape_cast %55 : vector<1x32xf32> to vector<1x32xf32>
    %57 = vector.broadcast %56 : vector<1x32xf32> to vector<8x32xf32>
    %58 = arith.truncf %7 : vector<8x16xf32> to vector<8x16xbf16>
    %cst_20 = arith.constant dense<0.000000e+00> : vector<8x32xf32>
    %59 = tpu.matmul %58, %0, %cst_20 {dimension_numbers = #tpu.dot_dimension_numbers<[1], [0], [0], [1], [0, 0, 1, 1], [], []>} : vector<8x16xbf16>, vector<16x32xbf16>, vector<8x32xf32> -> vector<8x32xf32>
    %60 = arith.addf %59, %12 : vector<8x32xf32>
    %61 = math.tanh %60 : vector<8x32xf32>
    %62 = arith.truncf %61 : vector<8x32xf32> to vector<8x32xbf16>
    %cst_21 = arith.constant dense<0.000000e+00> : vector<8x16xf32>
    %63 = tpu.matmul %62, %1, %cst_21 {dimension_numbers = #tpu.dot_dimension_numbers<[1], [0], [0], [1], [0, 0, 1, 1], [], []>} : vector<8x32xbf16>, vector<32x16xbf16>, vector<8x16xf32> -> vector<8x16xf32>
    %64 = arith.addf %63, %6 : vector<8x16xf32>
    %cst_22 = arith.constant 1.000000e-01 : f32
    %65 = vector.broadcast %cst_22 : f32 to vector<8x16xf32>
    %66 = arith.mulf %65, %64 : vector<8x16xf32>
    %67 = arith.addf %7, %66 : vector<8x16xf32>
    %68 = arith.truncf %67 : vector<8x16xf32> to vector<8x16xbf16>
    %cst_23 = arith.constant dense<0.000000e+00> : vector<8x32xf32>
    %69 = tpu.matmul %68, %0, %cst_23 {dimension_numbers = #tpu.dot_dimension_numbers<[1], [0], [0], [1], [0, 0, 1, 1], [], []>} : vector<8x16xbf16>, vector<16x32xbf16>, vector<8x32xf32> -> vector<8x32xf32>
    %70 = arith.addf %69, %17 : vector<8x32xf32>
    %71 = math.tanh %70 : vector<8x32xf32>
    %72 = arith.truncf %71 : vector<8x32xf32> to vector<8x32xbf16>
    %cst_24 = arith.constant dense<0.000000e+00> : vector<8x16xf32>
    %73 = tpu.matmul %72, %1, %cst_24 {dimension_numbers = #tpu.dot_dimension_numbers<[1], [0], [0], [1], [0, 0, 1, 1], [], []>} : vector<8x32xbf16>, vector<32x16xbf16>, vector<8x16xf32> -> vector<8x16xf32>
    %74 = arith.addf %73, %6 : vector<8x16xf32>
    %cst_25 = arith.constant 1.000000e-01 : f32
    %75 = vector.broadcast %cst_25 : f32 to vector<8x16xf32>
    %76 = arith.mulf %75, %74 : vector<8x16xf32>
    %77 = arith.addf %67, %76 : vector<8x16xf32>
    %78 = arith.truncf %77 : vector<8x16xf32> to vector<8x16xbf16>
    %cst_26 = arith.constant dense<0.000000e+00> : vector<8x32xf32>
    %79 = tpu.matmul %78, %0, %cst_26 {dimension_numbers = #tpu.dot_dimension_numbers<[1], [0], [0], [1], [0, 0, 1, 1], [], []>} : vector<8x16xbf16>, vector<16x32xbf16>, vector<8x32xf32> -> vector<8x32xf32>
    %80 = arith.addf %79, %22 : vector<8x32xf32>
    %81 = math.tanh %80 : vector<8x32xf32>
    %82 = arith.truncf %81 : vector<8x32xf32> to vector<8x32xbf16>
    %cst_27 = arith.constant dense<0.000000e+00> : vector<8x16xf32>
    %83 = tpu.matmul %82, %1, %cst_27 {dimension_numbers = #tpu.dot_dimension_numbers<[1], [0], [0], [1], [0, 0, 1, 1], [], []>} : vector<8x32xbf16>, vector<32x16xbf16>, vector<8x16xf32> -> vector<8x16xf32>
    %84 = arith.addf %83, %6 : vector<8x16xf32>
    %cst_28 = arith.constant 1.000000e-01 : f32
    %85 = vector.broadcast %cst_28 : f32 to vector<8x16xf32>
    %86 = arith.mulf %85, %84 : vector<8x16xf32>
    %87 = arith.addf %77, %86 : vector<8x16xf32>
    %88 = arith.truncf %87 : vector<8x16xf32> to vector<8x16xbf16>
    %cst_29 = arith.constant dense<0.000000e+00> : vector<8x32xf32>
    %89 = tpu.matmul %88, %0, %cst_29 {dimension_numbers = #tpu.dot_dimension_numbers<[1], [0], [0], [1], [0, 0, 1, 1], [], []>} : vector<8x16xbf16>, vector<16x32xbf16>, vector<8x32xf32> -> vector<8x32xf32>
    %90 = arith.addf %89, %27 : vector<8x32xf32>
    %91 = math.tanh %90 : vector<8x32xf32>
    %92 = arith.truncf %91 : vector<8x32xf32> to vector<8x32xbf16>
    %cst_30 = arith.constant dense<0.000000e+00> : vector<8x16xf32>
    %93 = tpu.matmul %92, %1, %cst_30 {dimension_numbers = #tpu.dot_dimension_numbers<[1], [0], [0], [1], [0, 0, 1, 1], [], []>} : vector<8x32xbf16>, vector<32x16xbf16>, vector<8x16xf32> -> vector<8x16xf32>
    %94 = arith.addf %93, %6 : vector<8x16xf32>
    %cst_31 = arith.constant 1.000000e-01 : f32
    %95 = vector.broadcast %cst_31 : f32 to vector<8x16xf32>
    %96 = arith.mulf %95, %94 : vector<8x16xf32>
    %97 = arith.addf %87, %96 : vector<8x16xf32>
    %98 = arith.truncf %97 : vector<8x16xf32> to vector<8x16xbf16>
    %cst_32 = arith.constant dense<0.000000e+00> : vector<8x32xf32>
    %99 = tpu.matmul %98, %0, %cst_32 {dimension_numbers = #tpu.dot_dimension_numbers<[1], [0], [0], [1], [0, 0, 1, 1], [], []>} : vector<8x16xbf16>, vector<16x32xbf16>, vector<8x32xf32> -> vector<8x32xf32>
    %100 = arith.addf %99, %32 : vector<8x32xf32>
    %101 = math.tanh %100 : vector<8x32xf32>
    %102 = arith.truncf %101 : vector<8x32xf32> to vector<8x32xbf16>
    %cst_33 = arith.constant dense<0.000000e+00> : vector<8x16xf32>
    %103 = tpu.matmul %102, %1, %cst_33 {dimension_numbers = #tpu.dot_dimension_numbers<[1], [0], [0], [1], [0, 0, 1, 1], [], []>} : vector<8x32xbf16>, vector<32x16xbf16>, vector<8x16xf32> -> vector<8x16xf32>
    %104 = arith.addf %103, %6 : vector<8x16xf32>
    %cst_34 = arith.constant 1.000000e-01 : f32
    %105 = vector.broadcast %cst_34 : f32 to vector<8x16xf32>
    %106 = arith.mulf %105, %104 : vector<8x16xf32>
    %107 = arith.addf %97, %106 : vector<8x16xf32>
    %108 = arith.truncf %107 : vector<8x16xf32> to vector<8x16xbf16>
    %cst_35 = arith.constant dense<0.000000e+00> : vector<8x32xf32>
    %109 = tpu.matmul %108, %0, %cst_35 {dimension_numbers = #tpu.dot_dimension_numbers<[1], [0], [0], [1], [0, 0, 1, 1], [], []>} : vector<8x16xbf16>, vector<16x32xbf16>, vector<8x32xf32> -> vector<8x32xf32>
    %110 = arith.addf %109, %37 : vector<8x32xf32>
    %111 = math.tanh %110 : vector<8x32xf32>
    %112 = arith.truncf %111 : vector<8x32xf32> to vector<8x32xbf16>
    %cst_36 = arith.constant dense<0.000000e+00> : vector<8x16xf32>
    %113 = tpu.matmul %112, %1, %cst_36 {dimension_numbers = #tpu.dot_dimension_numbers<[1], [0], [0], [1], [0, 0, 1, 1], [], []>} : vector<8x32xbf16>, vector<32x16xbf16>, vector<8x16xf32> -> vector<8x16xf32>
    %114 = arith.addf %113, %6 : vector<8x16xf32>
    %cst_37 = arith.constant 1.000000e-01 : f32
    %115 = vector.broadcast %cst_37 : f32 to vector<8x16xf32>
    %116 = arith.mulf %115, %114 : vector<8x16xf32>
    %117 = arith.addf %107, %116 : vector<8x16xf32>
    %118 = arith.truncf %117 : vector<8x16xf32> to vector<8x16xbf16>
    %cst_38 = arith.constant dense<0.000000e+00> : vector<8x32xf32>
    %119 = tpu.matmul %118, %0, %cst_38 {dimension_numbers = #tpu.dot_dimension_numbers<[1], [0], [0], [1], [0, 0, 1, 1], [], []>} : vector<8x16xbf16>, vector<16x32xbf16>, vector<8x32xf32> -> vector<8x32xf32>
    %120 = arith.addf %119, %42 : vector<8x32xf32>
    %121 = math.tanh %120 : vector<8x32xf32>
    %122 = arith.truncf %121 : vector<8x32xf32> to vector<8x32xbf16>
    %cst_39 = arith.constant dense<0.000000e+00> : vector<8x16xf32>
    %123 = tpu.matmul %122, %1, %cst_39 {dimension_numbers = #tpu.dot_dimension_numbers<[1], [0], [0], [1], [0, 0, 1, 1], [], []>} : vector<8x32xbf16>, vector<32x16xbf16>, vector<8x16xf32> -> vector<8x16xf32>
    %124 = arith.addf %123, %6 : vector<8x16xf32>
    %cst_40 = arith.constant 1.000000e-01 : f32
    %125 = vector.broadcast %cst_40 : f32 to vector<8x16xf32>
    %126 = arith.mulf %125, %124 : vector<8x16xf32>
    %127 = arith.addf %117, %126 : vector<8x16xf32>
    %128 = arith.truncf %127 : vector<8x16xf32> to vector<8x16xbf16>
    %cst_41 = arith.constant dense<0.000000e+00> : vector<8x32xf32>
    %129 = tpu.matmul %128, %0, %cst_41 {dimension_numbers = #tpu.dot_dimension_numbers<[1], [0], [0], [1], [0, 0, 1, 1], [], []>} : vector<8x16xbf16>, vector<16x32xbf16>, vector<8x32xf32> -> vector<8x32xf32>
    %130 = arith.addf %129, %47 : vector<8x32xf32>
    %131 = math.tanh %130 : vector<8x32xf32>
    %132 = arith.truncf %131 : vector<8x32xf32> to vector<8x32xbf16>
    %cst_42 = arith.constant dense<0.000000e+00> : vector<8x16xf32>
    %133 = tpu.matmul %132, %1, %cst_42 {dimension_numbers = #tpu.dot_dimension_numbers<[1], [0], [0], [1], [0, 0, 1, 1], [], []>} : vector<8x32xbf16>, vector<32x16xbf16>, vector<8x16xf32> -> vector<8x16xf32>
    %134 = arith.addf %133, %6 : vector<8x16xf32>
    %cst_43 = arith.constant 1.000000e-01 : f32
    %135 = vector.broadcast %cst_43 : f32 to vector<8x16xf32>
    %136 = arith.mulf %135, %134 : vector<8x16xf32>
    %137 = arith.addf %127, %136 : vector<8x16xf32>
    %138 = arith.truncf %137 : vector<8x16xf32> to vector<8x16xbf16>
    %cst_44 = arith.constant dense<0.000000e+00> : vector<8x32xf32>
    %139 = tpu.matmul %138, %0, %cst_44 {dimension_numbers = #tpu.dot_dimension_numbers<[1], [0], [0], [1], [0, 0, 1, 1], [], []>} : vector<8x16xbf16>, vector<16x32xbf16>, vector<8x32xf32> -> vector<8x32xf32>
    %140 = arith.addf %139, %52 : vector<8x32xf32>
    %141 = math.tanh %140 : vector<8x32xf32>
    %142 = arith.truncf %141 : vector<8x32xf32> to vector<8x32xbf16>
    %cst_45 = arith.constant dense<0.000000e+00> : vector<8x16xf32>
    %143 = tpu.matmul %142, %1, %cst_45 {dimension_numbers = #tpu.dot_dimension_numbers<[1], [0], [0], [1], [0, 0, 1, 1], [], []>} : vector<8x32xbf16>, vector<32x16xbf16>, vector<8x16xf32> -> vector<8x16xf32>
    %144 = arith.addf %143, %6 : vector<8x16xf32>
    %cst_46 = arith.constant 1.000000e-01 : f32
    %145 = vector.broadcast %cst_46 : f32 to vector<8x16xf32>
    %146 = arith.mulf %145, %144 : vector<8x16xf32>
    %147 = arith.addf %137, %146 : vector<8x16xf32>
    %148 = arith.truncf %147 : vector<8x16xf32> to vector<8x16xbf16>
    %cst_47 = arith.constant dense<0.000000e+00> : vector<8x32xf32>
    %149 = tpu.matmul %148, %0, %cst_47 {dimension_numbers = #tpu.dot_dimension_numbers<[1], [0], [0], [1], [0, 0, 1, 1], [], []>} : vector<8x16xbf16>, vector<16x32xbf16>, vector<8x32xf32> -> vector<8x32xf32>
    %150 = arith.addf %149, %57 : vector<8x32xf32>
    %151 = math.tanh %150 : vector<8x32xf32>
    %152 = arith.truncf %151 : vector<8x32xf32> to vector<8x32xbf16>
    %cst_48 = arith.constant dense<0.000000e+00> : vector<8x16xf32>
    %153 = tpu.matmul %152, %1, %cst_48 {dimension_numbers = #tpu.dot_dimension_numbers<[1], [0], [0], [1], [0, 0, 1, 1], [], []>} : vector<8x32xbf16>, vector<32x16xbf16>, vector<8x16xf32> -> vector<8x16xf32>
    %154 = arith.addf %153, %6 : vector<8x16xf32>
    %cst_49 = arith.constant 1.000000e-01 : f32
    %155 = vector.broadcast %cst_49 : f32 to vector<8x16xf32>
    %156 = arith.mulf %155, %154 : vector<8x16xf32>
    %157 = arith.addf %147, %156 : vector<8x16xf32>
    %c0_50 = arith.constant 0 : index
    %c0_51 = arith.constant 0 : index
    %c0_52 = arith.constant 0 : index
    %158 = vector.load %arg6[%c0_50, %c0_51, %c0_52] : memref<1x8x16xf32, #tpu.memory_space<vmem>>, vector<1x8x16xf32>
    %159 = vector.shape_cast %158 : vector<1x8x16xf32> to vector<8x16xf32>
    %160 = vector.shape_cast %157 : vector<8x16xf32> to vector<1x8x16xf32>
    tpu.vector_store %arg6[%c0_50, %c0_51, %c0_52], %160 {strides = array<i32>} : memref<1x8x16xf32, #tpu.memory_space<vmem>>, vector<1x8x16xf32>,
    return
  }
}

</mosaic_0001>

<bundles_post_ra>
// kernel: tpu_custom_call.1
= control target key start
LH: loop header
LB: loop body
LE: loop exit
PB: predicated region body
PF: predicated region fallthrough
CT: control target
= control target key end

     0   :  { %v1330_v1 = vmov 0.0   ;;  %vm1331_vm0 = vmmov 0   ;;  %vm128_vm1 = vcmask 130048   ;;  %s1576_s0 = inlined_call_operand.vmem [shape: f32[8,16], index: 0, kind: input, shape index: {}]   ;;  %s1577_s1 = inlined_call_operand.vmem [shape: bf16[16,32], index: 1, kind: input, shape index: {}]   ;;  %s1578_s2 = inlined_call_operand.vmem [shape: f32[1,32], index: 2, kind: input, shape index: {}]   ;;  %s1579_s3 = inlined_call_operand.vmem [shape: f32[1,32], index: 3, kind: input, shape index: {}]   ;;  %s1580_s4 = inlined_call_operand.vmem [shape: bf16[32,16], index: 4, kind: input, shape index: {}]   ;;  %s1581_s5 = inlined_call_operand.vmem [shape: f32[1,16], index: 5, kind: input, shape index: {}]   ;;  %s1582_s6 = inlined_call_operand.hbm [shape: f32[1,8,16], index: 6, kind: output, shape index: {}]  }
   0x1   :  { %v1371_v0 = vld [vmem:[%s1577_s1] sm:$0xff]   ;;  %1140 = vmatprep.subr.bf16.mxu0 %v1330_v1  ;;  %1146 = vmatprep.subr.bf16.mxu1 %v1330_v1 }
   0x2   :  { %v40_v2 = vld [vmem:[%s1576_s0] sm:$0xff]  ;;  %1141 = vmatpush3.bf16.msra.mxu0 %v1371_v0  ;;  %1142 = vmatprep.mubr.msk.bf16.mxu0 %vm1331_vm0, %v1330_v1 }
   0x3   :  { %v121_v3 = vpack.c.bf16 %v40_v2, %v40_v2  ;;  %1150 = vmatprep.mubr.msk.bf16.mxu1 %vm1331_vm0, %v1330_v1  ;;  %1154 = vmatprep.subr.bf16.mxu0 %v1330_v1 }
   0x4   :  { %11 = vsyncpa [#allocation3], 0  ;;  %v1392_v4 = vld [vmem:[%s1580_s4] sm:$0xff]   ;;  %v1399_v5 = vld [vmem:[%s1580_s4 + $0x8] sm:$0xff]   ;;  %v44_v6 = vlaneseq  ;;  %vm186_vm2 = vcmask 261120   ;;  %s1332_s4 = smov [#allocation2]  }
   0x5   :  { %1143 = vmatmul.mubr.msk.bf16.vlgmr.msra.gmra.mrb[0].mxu0 %vm128_vm1, %v121_v3  ;;  %1147 = vmatpush3.bf16.msra.mxu1 %v1392_v4  ;;  %v1406_v7 = vld [vmem:[%s1579_s3] sm:$0x1] }
   0x6   :  { %1155 = vmatpush3.bf16.msra.mxu0 %v1371_v0  ;;  %1156 = vmatprep.mubr.msk.bf16.mxu0 %vm1331_vm0, %v1330_v1  ;;  %v41_v8 = vmul.f32 0.0, %v1406_v7  ;;  %v45_v9 = vshrl.u32 %v44_v6, 7  ;;  %v1412_v10 = vld [vmem:[%s1578_s2] sm:$0x1]  ;;  %v49_v30 = vmul.f32 0.1, %v1406_v7 }
   0x7   :  { %1168 = vmatprep.subr.bf16.mxu0 %v1330_v1  ;;  %1148 = vmatprep.subr.bf16.mxu1 %v1330_v1  ;;  %v1428_v21 = vld [vmem:[%s1581_s5] ss:$0 sm:$0xff]  ;;  %v57_v48 = vmul.f32 0.2, %v1406_v7  ;;  %v65_v6 = vmul.f32 0.3, %v1406_v7 }
   0x8   :  { %v42_v11 = vadd.f32 %v41_v8, %v1412_v10  ;;  %v1415_v12 = vsub.s32 0, %v45_v9  ;;  %v50_v31 = vadd.f32 %v49_v30, %v1412_v10  ;;  %s1058_s5 = sshll.u32 %s1332_s4, 4  ;;  %s1059_s5 = int_to_ptr.vmem [resolvable:$true] %s1058_s5 }
   0x9   :  { %1149 = vmatpush3.bf16.msra.mxu1 %v1399_v5  ;;  %v58_v49 = vadd.f32 %v57_v48, %v1412_v10  ;;  %v66_v8 = vadd.f32 %v65_v6, %v1412_v10  ;;  %s1306_s7 = scalar_lea.vmem %s1059_s5, 128  ;;  %p1311_p1 = scmp.lt.s32.totalorder %s1059_s5, %s1059_s5 }
   0xa   :  { %1160 = vmatprep.subr.bf16.mxu1 %v1330_v1  ;;  %v47_v13 = vrot.slane %v42_v11, %v1415_v12  ;;  %v55_v32 = vrot.slane %v50_v31, %v1415_v12  ;;  %p1307_p0 = scmp.ne.s32.totalorder %s1059_s5, %s1306_s7  ;;  %p1312_p2 = scmp.lt.s32.totalorder %s1306_s7, %s1306_s7 }
   0xb   :  { %v63_v50 = vrot.slane %v58_v49, %v1415_v12  ;;  %v71_v9 = vrot.slane %v66_v8, %v1415_v12 }
   0xc   :  { %p1313_p3 = por %p1312_p2, %p1311_p1 }
   0xe   :  { %p1314_p4 = pnand %p1313_p3, %p1307_p0 }
  0xd8   :  { %v166_v14 = vpop.f32.mrb[0].mxu0 }
  0xd9   :  { %v167_v15 = vadd.f32 %v166_v14, %v47_v13  ;;  %v1144_v16 = vpop.f32.mrb[1].mxu0 }
  0xda   :  { %v169_v17 = vpop.f32.mrb[2].mxu0 }
  0xdb   :  { %1286 = vtanh.f32 %v167_v15  ;;  %v1145_v18 = vpop.f32.mrb[3].mxu0 }
  0xe5   :  { %v1287_v19 = vpop.eup %1286 }
  0xe6   :  { %v173_v20 = vpack.c.bf16 %v1287_v19, %v1287_v19 }
  0xe8   :  { %1151 = vmatmul.mubr.msk.bf16.vlgmr.msra.gmra.mrb[0].mxu1 %vm186_vm2, %v173_v20 }
  0xe9   :  { %1161 = vmatpush3.bf16.msra.mxu1 %v1392_v4  ;;  %1164 = vmatprep.mubr.msk.bf16.mxu1 %vm1331_vm0, %v1330_v1 }
  0xea   :  { %1162 = vmatprep.subr.bf16.mxu1 %v1330_v1 }
  0xed   :  { %1163 = vmatpush3.bf16.msra.mxu1 %v1399_v5 }
  0xee   :  { %1174 = vmatprep.subr.bf16.mxu1 %v1330_v1 }
 0x1bb   :  { %v224_v22 = vpop.f32.mrb[0].mxu1 }
 0x1bc   :  { %v225_v23 = vadd.f32 %v1428_v21, %v224_v22  ;;  %v1152_v24 = vpop.f32.mrb[1].mxu1 }
 0x1bd   :  { %v227_v25 = vpop.f32.mrb[2].mxu1 }
 0x1be   :  { %v230_v26 = vmul.f32 0.1, %v225_v23  ;;  %v1153_v27 = vpop.f32.mrb[3].mxu1 }
 0x1c0   :  { %v231_v28 = vadd.f32 %v230_v26, %v40_v2 }
 0x1c2   :  { %v232_v29 = vpack.c.bf16 %v231_v28, %v231_v28 }
 0x1c4   :  { %1157 = vmatmul.mubr.msk.bf16.vlgmr.msra.gmra.mrb[4].mxu0 %vm128_vm1, %v232_v29 }
 0x1c5   :  { %1169 = vmatpush3.bf16.msra.mxu0 %v1371_v0  ;;  %1170 = vmatprep.mubr.msk.bf16.mxu0 %vm1331_vm0, %v1330_v1 }
 0x1c6   :  { %1182 = vmatprep.subr.bf16.mxu0 %v1330_v1 }
 0x297   :  { %v270_v33 = vpop.f32.mrb[4].mxu0 }
 0x298   :  { %v271_v34 = vadd.f32 %v270_v33, %v55_v32  ;;  %v1158_v35 = vpop.f32.mrb[5].mxu0 }
 0x299   :  { %v273_v36 = vpop.f32.mrb[6].mxu0 }
 0x29a   :  { %1288 = vtanh.f32 %v271_v34  ;;  %v1159_v37 = vpop.f32.mrb[7].mxu0 }
 0x2a4   :  { %v1289_v38 = vpop.eup %1288 }
 0x2a5   :  { %v277_v39 = vpack.c.bf16 %v1289_v38, %v1289_v38 }
 0x2a7   :  { %1165 = vmatmul.mubr.msk.bf16.vlgmr.msra.gmra.mrb[4].mxu1 %vm186_vm2, %v277_v39 }
 0x2a8   :  { %1175 = vmatpush3.bf16.msra.mxu1 %v1392_v4  ;;  %1178 = vmatprep.mubr.msk.bf16.mxu1 %vm1331_vm0, %v1330_v1 }
 0x2a9   :  { %1176 = vmatprep.subr.bf16.mxu1 %v1330_v1 }
 0x2ac   :  { %1177 = vmatpush3.bf16.msra.mxu1 %v1399_v5 }
 0x2ad   :  { %1188 = vmatprep.subr.bf16.mxu1 %v1330_v1 }
 0x37a   :  { %v315_v40 = vpop.f32.mrb[4].mxu1 }
 0x37b   :  { %v316_v41 = vadd.f32 %v1428_v21, %v315_v40  ;;  %v1166_v42 = vpop.f32.mrb[5].mxu1 }
 0x37c   :  { %v318_v43 = vpop.f32.mrb[6].mxu1 }
 0x37d   :  { %v321_v44 = vmul.f32 0.1, %v316_v41  ;;  %v1167_v45 = vpop.f32.mrb[7].mxu1 }
 0x37f   :  { %v322_v46 = vadd.f32 %v321_v44, %v231_v28  ;;  %v73_v28 = vmul.f32 0.4, %v1406_v7 }
 0x381   :  { %v323_v47 = vpack.c.bf16 %v322_v46, %v322_v46  ;;  %v74_v29 = vadd.f32 %v73_v28, %v1412_v10 }
 0x383   :  { %1171 = vmatmul.mubr.msk.bf16.vlgmr.msra.gmra.mrb[8].mxu0 %vm128_vm1, %v323_v47  ;;  %v79_v30 = vrot.slane %v74_v29, %v1415_v12 }
 0x384   :  { %1183 = vmatpush3.bf16.msra.mxu0 %v1371_v0  ;;  %1184 = vmatprep.mubr.msk.bf16.mxu0 %vm1331_vm0, %v1330_v1 }
 0x385   :  { %1196 = vmatprep.subr.bf16.mxu0 %v1330_v1 }
 0x456   :  { %v361_v51 = vpop.f32.mrb[8].mxu0 }
 0x457   :  { %v362_v52 = vadd.f32 %v361_v51, %v63_v50  ;;  %v1172_v53 = vpop.f32.mrb[9].mxu0 }
 0x458   :  { %v364_v54 = vpop.f32.mrb[10].mxu0 }
 0x459   :  { %1290 = vtanh.f32 %v362_v52  ;;  %v1173_v55 = vpop.f32.mrb[11].mxu0 }
 0x463   :  { %v1291_v56 = vpop.eup %1290 }
 0x464   :  { %v368_v57 = vpack.c.bf16 %v1291_v56, %v1291_v56 }
 0x466   :  { %1179 = vmatmul.mubr.msk.bf16.vlgmr.msra.gmra.mrb[8].mxu1 %vm186_vm2, %v368_v57 }
 0x467   :  { %1189 = vmatpush3.bf16.msra.mxu1 %v1392_v4  ;;  %1192 = vmatprep.mubr.msk.bf16.mxu1 %vm1331_vm0, %v1330_v1 }
 0x468   :  { %1190 = vmatprep.subr.bf16.mxu1 %v1330_v1 }
 0x46b   :  { %1191 = vmatpush3.bf16.msra.mxu1 %v1399_v5 }
 0x46c   :  { %1202 = vmatprep.subr.bf16.mxu1 %v1330_v1 }
 0x539   :  { %v406_v58 = vpop.f32.mrb[8].mxu1 }
 0x53a   :  { %v407_v59 = vadd.f32 %v1428_v21, %v406_v58  ;;  %v1180_v60 = vpop.f32.mrb[9].mxu1 }
 0x53b   :  { %v409_v61 = vpop.f32.mrb[10].mxu1 }
 0x53c   :  { %v412_v62 = vmul.f32 0.1, %v407_v59  ;;  %v1181_v63 = vpop.f32.mrb[11].mxu1 }
 0x53e   :  { %v413_v2 = vadd.f32 %v412_v62, %v322_v46  ;;  %v81_v46 = vmul.f32 0.5, %v1406_v7 }
 0x540   :  { %v414_v3 = vpack.c.bf16 %v413_v2, %v413_v2  ;;  %v82_v47 = vadd.f32 %v81_v46, %v1412_v10 }
 0x542   :  { %1185 = vmatmul.mubr.msk.bf16.vlgmr.msra.gmra.mrb[12].mxu0 %vm128_vm1, %v414_v3  ;;  %v87_v48 = vrot.slane %v82_v47, %v1415_v12 }
 0x543   :  { %1197 = vmatpush3.bf16.msra.mxu0 %v1371_v0  ;;  %1198 = vmatprep.mubr.msk.bf16.mxu0 %vm1331_vm0, %v1330_v1 }
 0x544   :  { %1210 = vmatprep.subr.bf16.mxu0 %v1330_v1 }
 0x615   :  { %v452_v11 = vpop.f32.mrb[12].mxu0 }
 0x616   :  { %v453_v13 = vadd.f32 %v452_v11, %v71_v9  ;;  %v1186_v14 = vpop.f32.mrb[13].mxu0 }
 0x617   :  { %v455_v15 = vpop.f32.mrb[14].mxu0 }
 0x618   :  { %1292 = vtanh.f32 %v453_v13  ;;  %v1187_v16 = vpop.f32.mrb[15].mxu0 }
 0x622   :  { %v1293_v17 = vpop.eup %1292 }
 0x623   :  { %v459_v18 = vpack.c.bf16 %v1293_v17, %v1293_v17 }
 0x625   :  { %1193 = vmatmul.mubr.msk.bf16.vlgmr.msra.gmra.mrb[12].mxu1 %vm186_vm2, %v459_v18 }
 0x626   :  { %1203 = vmatpush3.bf16.msra.mxu1 %v1392_v4  ;;  %1206 = vmatprep.mubr.msk.bf16.mxu1 %vm1331_vm0, %v1330_v1 }
 0x627   :  { %1204 = vmatprep.subr.bf16.mxu1 %v1330_v1 }
 0x62a   :  { %1205 = vmatpush3.bf16.msra.mxu1 %v1399_v5 }
 0x62b   :  { %1216 = vmatprep.subr.bf16.mxu1 %v1330_v1 }
 0x6f8   :  { %v497_v19 = vpop.f32.mrb[12].mxu1 }
 0x6f9   :  { %v498_v20 = vadd.f32 %v1428_v21, %v497_v19  ;;  %v1194_v22 = vpop.f32.mrb[13].mxu1 }
 0x6fa   :  { %v500_v23 = vpop.f32.mrb[14].mxu1 }
 0x6fb   :  { %v503_v24 = vmul.f32 0.1, %v498_v20  ;;  %v1195_v25 = vpop.f32.mrb[15].mxu1 }
 0x6fd   :  { %v504_v26 = vadd.f32 %v503_v24, %v413_v2  ;;  %v89_v2 = vmul.f32 0.6, %v1406_v7 }
 0x6ff   :  { %v505_v27 = vpack.c.bf16 %v504_v26, %v504_v26  ;;  %v90_v3 = vadd.f32 %v89_v2, %v1412_v10 }
 0x701   :  { %1199 = vmatmul.mubr.msk.bf16.vlgmr.msra.gmra.mrb[16].mxu0 %vm128_vm1, %v505_v27  ;;  %v95_v6 = vrot.slane %v90_v3, %v1415_v12 }
 0x702   :  { %1211 = vmatpush3.bf16.msra.mxu0 %v1371_v0  ;;  %1212 = vmatprep.mubr.msk.bf16.mxu0 %vm1331_vm0, %v1330_v1 }
 0x703   :  { %1224 = vmatprep.subr.bf16.mxu0 %v1330_v1 }
 0x7d4   :  { %v543_v31 = vpop.f32.mrb[16].mxu0 }
 0x7d5   :  { %v544_v32 = vadd.f32 %v543_v31, %v79_v30  ;;  %v1200_v33 = vpop.f32.mrb[17].mxu0 }
 0x7d6   :  { %v546_v34 = vpop.f32.mrb[18].mxu0 }
 0x7d7   :  { %1294 = vtanh.f32 %v544_v32  ;;  %v1201_v35 = vpop.f32.mrb[19].mxu0 }
 0x7e1   :  { %v1295_v36 = vpop.eup %1294 }
 0x7e2   :  { %v550_v37 = vpack.c.bf16 %v1295_v36, %v1295_v36 }
 0x7e4   :  { %1207 = vmatmul.mubr.msk.bf16.vlgmr.msra.gmra.mrb[16].mxu1 %vm186_vm2, %v550_v37 }
 0x7e5   :  { %1217 = vmatpush3.bf16.msra.mxu1 %v1392_v4  ;;  %1220 = vmatprep.mubr.msk.bf16.mxu1 %vm1331_vm0, %v1330_v1 }
 0x7e6   :  { %1218 = vmatprep.subr.bf16.mxu1 %v1330_v1 }
 0x7e9   :  { %1219 = vmatpush3.bf16.msra.mxu1 %v1399_v5 }
 0x7ea   :  { %1230 = vmatprep.subr.bf16.mxu1 %v1330_v1 }
 0x8b7   :  { %v588_v38 = vpop.f32.mrb[16].mxu1 }
 0x8b8   :  { %v589_v39 = vadd.f32 %v1428_v21, %v588_v38  ;;  %v1208_v40 = vpop.f32.mrb[17].mxu1 }
 0x8b9   :  { %v591_v41 = vpop.f32.mrb[18].mxu1 }
 0x8ba   :  { %v594_v42 = vmul.f32 0.1, %v589_v39  ;;  %v1209_v43 = vpop.f32.mrb[19].mxu1 }
 0x8bc   :  { %v595_v44 = vadd.f32 %v594_v42, %v504_v26  ;;  %v97_v26 = vmul.f32 0.7, %v1406_v7 }
 0x8be   :  { %v596_v45 = vpack.c.bf16 %v595_v44, %v595_v44  ;;  %v98_v27 = vadd.f32 %v97_v26, %v1412_v10 }
 0x8c0   :  { %1213 = vmatmul.mubr.msk.bf16.vlgmr.msra.gmra.mrb[20].mxu0 %vm128_vm1, %v596_v45  ;;  %v103_v28 = vrot.slane %v98_v27, %v1415_v12 }
 0x8c1   :  { %1225 = vmatpush3.bf16.msra.mxu0 %v1371_v0  ;;  %1226 = vmatprep.mubr.msk.bf16.mxu0 %vm1331_vm0, %v1330_v1 }
 0x8c2   :  { %1238 = vmatprep.subr.bf16.mxu0 %v1330_v1 }
 0x993   :  { %v634_v49 = vpop.f32.mrb[20].mxu0 }
 0x994   :  { %v635_v50 = vadd.f32 %v634_v49, %v87_v48  ;;  %v1214_v51 = vpop.f32.mrb[21].mxu0 }
 0x995   :  { %v637_v52 = vpop.f32.mrb[22].mxu0 }
 0x996   :  { %1296 = vtanh.f32 %v635_v50  ;;  %v1215_v53 = vpop.f32.mrb[23].mxu0 }
 0x9a0   :  { %v1297_v54 = vpop.eup %1296 }
 0x9a1   :  { %v641_v55 = vpack.c.bf16 %v1297_v54, %v1297_v54 }
 0x9a3   :  { %1221 = vmatmul.mubr.msk.bf16.vlgmr.msra.gmra.mrb[20].mxu1 %vm186_vm2, %v641_v55 }
 0x9a4   :  { %1231 = vmatpush3.bf16.msra.mxu1 %v1392_v4  ;;  %1234 = vmatprep.mubr.msk.bf16.mxu1 %vm1331_vm0, %v1330_v1 }
 0x9a5   :  { %1232 = vmatprep.subr.bf16.mxu1 %v1330_v1 }
 0x9a8   :  { %1233 = vmatpush3.bf16.msra.mxu1 %v1399_v5 }
 0x9a9   :  { %1244 = vmatprep.subr.bf16.mxu1 %v1330_v1 }
 0xa76   :  { %v679_v56 = vpop.f32.mrb[20].mxu1 }
 0xa77   :  { %v680_v57 = vadd.f32 %v1428_v21, %v679_v56  ;;  %v1222_v58 = vpop.f32.mrb[21].mxu1 }
 0xa78   :  { %v682_v59 = vpop.f32.mrb[22].mxu1 }
 0xa79   :  { %v685_v60 = vmul.f32 0.1, %v680_v57  ;;  %v1223_v61 = vpop.f32.mrb[23].mxu1 }
 0xa7b   :  { %v686_v62 = vadd.f32 %v685_v60, %v595_v44  ;;  %v105_v44 = vmul.f32 0.8, %v1406_v7 }
 0xa7d   :  { %v687_v63 = vpack.c.bf16 %v686_v62, %v686_v62  ;;  %v106_v45 = vadd.f32 %v105_v44, %v1412_v10 }
 0xa7f   :  { %1227 = vmatmul.mubr.msk.bf16.vlgmr.msra.gmra.mrb[24].mxu0 %vm128_vm1, %v687_v63  ;;  %v111_v46 = vrot.slane %v106_v45, %v1415_v12 }
 0xa80   :  { %1239 = vmatpush3.bf16.msra.mxu0 %v1371_v0  ;;  %1240 = vmatprep.mubr.msk.bf16.mxu0 %vm1331_vm0, %v1330_v1 }
 0xa81   :  { %1252 = vmatprep.subr.bf16.mxu0 %v1330_v1 }
 0xb52   :  { %v725_v8 = vpop.f32.mrb[24].mxu0 }
 0xb53   :  { %v726_v9 = vadd.f32 %v725_v8, %v95_v6  ;;  %v1228_v11 = vpop.f32.mrb[25].mxu0 }
 0xb54   :  { %v728_v13 = vpop.f32.mrb[26].mxu0 }
 0xb55   :  { %1298 = vtanh.f32 %v726_v9  ;;  %v1229_v14 = vpop.f32.mrb[27].mxu0 }
 0xb5f   :  { %v1299_v15 = vpop.eup %1298 }
 0xb60   :  { %v732_v16 = vpack.c.bf16 %v1299_v15, %v1299_v15 }
 0xb62   :  { %1235 = vmatmul.mubr.msk.bf16.vlgmr.msra.gmra.mrb[24].mxu1 %vm186_vm2, %v732_v16 }
 0xb63   :  { %1245 = vmatpush3.bf16.msra.mxu1 %v1392_v4  ;;  %1248 = vmatprep.mubr.msk.bf16.mxu1 %vm1331_vm0, %v1330_v1 }
 0xb64   :  { %1246 = vmatprep.subr.bf16.mxu1 %v1330_v1 }
 0xb67   :  { %1247 = vmatpush3.bf16.msra.mxu1 %v1399_v5 }
 0xb68   :  { %1258 = vmatprep.subr.bf16.mxu1 %v1330_v1 }
 0xc35   :  { %v770_v17 = vpop.f32.mrb[24].mxu1 }
 0xc36   :  { %v771_v18 = vadd.f32 %v1428_v21, %v770_v17  ;;  %v1236_v19 = vpop.f32.mrb[25].mxu1 }
 0xc37   :  { %v773_v20 = vpop.f32.mrb[26].mxu1 }
 0xc38   :  { %v776_v22 = vmul.f32 0.1, %v771_v18  ;;  %v1237_v23 = vpop.f32.mrb[27].mxu1 }
 0xc3a   :  { %v777_v24 = vadd.f32 %v776_v22, %v686_v62 }
 0xc3c   :  { %v778_v25 = vpack.c.bf16 %v777_v24, %v777_v24 }
 0xc3e   :  { %1241 = vmatmul.mubr.msk.bf16.vlgmr.msra.gmra.mrb[28].mxu0 %vm128_vm1, %v778_v25 }
 0xc3f   :  { %1253 = vmatpush3.bf16.msra.mxu0 %v1371_v0  ;;  %1254 = vmatprep.mubr.msk.bf16.mxu0 %vm1331_vm0, %v1330_v1 }
 0xc40   :  { %1266 = vmatprep.subr.bf16.mxu0 %v1330_v1 }
 0xd11   :  { %v816_v29 = vpop.f32.mrb[28].mxu0 }
 0xd12   :  { %v817_v30 = vadd.f32 %v816_v29, %v103_v28  ;;  %v1242_v31 = vpop.f32.mrb[29].mxu0 }
 0xd13   :  { %v819_v32 = vpop.f32.mrb[30].mxu0 }
 0xd14   :  { %1300 = vtanh.f32 %v817_v30  ;;  %v1243_v33 = vpop.f32.mrb[31].mxu0 }
 0xd1e   :  { %v1301_v34 = vpop.eup %1300 }
 0xd1f   :  { %v823_v35 = vpack.c.bf16 %v1301_v34, %v1301_v34 }
 0xd21   :  { %1249 = vmatmul.mubr.msk.bf16.vlgmr.msra.gmra.mrb[28].mxu1 %vm186_vm2, %v823_v35 }
 0xd22   :  { %1259 = vmatpush3.bf16.msra.mxu1 %v1392_v4  ;;  %1262 = vmatprep.mubr.msk.bf16.mxu1 %vm1331_vm0, %v1330_v1 }
 0xd23   :  { %1260 = vmatprep.subr.bf16.mxu1 %v1330_v1 }
 0xd26   :  { %1261 = vmatpush3.bf16.msra.mxu1 %v1399_v5 }
 0xd27   :  { %1272 = vmatprep.subr.bf16.mxu1 %v1330_v1 }
 0xdf4   :  { %v861_v36 = vpop.f32.mrb[28].mxu1 }
 0xdf5   :  { %v862_v37 = vadd.f32 %v1428_v21, %v861_v36  ;;  %v1250_v38 = vpop.f32.mrb[29].mxu1 }
 0xdf6   :  { %v864_v39 = vpop.f32.mrb[30].mxu1 }
 0xdf7   :  { %v867_v40 = vmul.f32 0.1, %v862_v37  ;;  %v1251_v41 = vpop.f32.mrb[31].mxu1 }
 0xdf9   :  { %v868_v42 = vadd.f32 %v867_v40, %v777_v24 }
 0xdfb   :  { %v869_v43 = vpack.c.bf16 %v868_v42, %v868_v42 }
 0xdfd   :  { %1255 = vmatmul.mubr.msk.bf16.vlgmr.msra.gmra.mrb[32].mxu0 %vm128_vm1, %v869_v43 }
 0xdfe   :  { %1267 = vmatpush3.bf16.msra.mxu0 %v1371_v0  ;;  %1268 = vmatprep.mubr.msk.bf16.mxu0 %vm1331_vm0, %v1330_v1 }
 0xed0   :  { %v907_v47 = vpop.f32.mrb[32].mxu0 }
 0xed1   :  { %v908_v48 = vadd.f32 %v907_v47, %v111_v46  ;;  %v1256_v49 = vpop.f32.mrb[33].mxu0 }
 0xed2   :  { %v910_v50 = vpop.f32.mrb[34].mxu0 }
 0xed3   :  { %1302 = vtanh.f32 %v908_v48  ;;  %v1257_v51 = vpop.f32.mrb[35].mxu0 }
 0xedd   :  { %v1303_v52 = vpop.eup %1302 }
 0xede   :  { %v914_v53 = vpack.c.bf16 %v1303_v52, %v1303_v52 }
 0xee0   :  { %1263 = vmatmul.mubr.msk.bf16.vlgmr.msra.gmra.mrb[32].mxu1 %vm186_vm2, %v914_v53 }
 0xee1   :  { %1273 = vmatpush3.bf16.msra.mxu1 %v1392_v4  ;;  %1276 = vmatprep.mubr.msk.bf16.mxu1 %vm1331_vm0, %v1330_v1  ;;  %v113_v4 = vmul.f32 0.9, %v1406_v7 }
 0xee2   :  { %1274 = vmatprep.subr.bf16.mxu1 %v1330_v1 }
 0xee3   :  { %v114_v61 = vadd.f32 %v113_v4, %v1412_v10 }
 0xee5   :  { %1275 = vmatpush3.bf16.msra.mxu1 %v1399_v5  ;;  %v119_v62 = vrot.slane %v114_v61, %v1415_v12 }
 0xfb3   :  { %v952_v0 = vpop.f32.mrb[32].mxu1 }
 0xfb4   :  { %v953_v54 = vadd.f32 %v1428_v21, %v952_v0  ;;  %v1264_v55 = vpop.f32.mrb[33].mxu1 }
 0xfb5   :  { %v955_v56 = vpop.f32.mrb[34].mxu1 }
 0xfb6   :  { %v958_v57 = vmul.f32 0.1, %v953_v54  ;;  %v1265_v58 = vpop.f32.mrb[35].mxu1 }
 0xfb8   :  { %v959_v59 = vadd.f32 %v958_v57, %v868_v42 }
 0xfba   :  { %v960_v60 = vpack.c.bf16 %v959_v59, %v959_v59 }
 0xfbc   :  { %1269 = vmatmul.mubr.msk.bf16.vlgmr.msra.gmra.mrb[36].mxu0 %vm128_vm1, %v960_v60 }
0x108f   :  { %v998_v1 = vpop.f32.mrb[36].mxu0 }
0x1090   :  { %v999_v63 = vadd.f32 %v998_v1, %v119_v62  ;;  %v1270_v5 = vpop.f32.mrb[37].mxu0 }
0x1091   :  { %v1001_v2 = vpop.f32.mrb[38].mxu0 }
0x1092   :  { %1304 = vtanh.f32 %v999_v63  ;;  %v1271_v3 = vpop.f32.mrb[39].mxu0 }
0x109c   :  { %v1305_v6 = vpop.eup %1304 }
0x109d   :  { %v1005_v8 = vpack.c.bf16 %v1305_v6, %v1305_v6 }
0x109f   :  { %1277 = vmatmul.mubr.msk.bf16.vlgmr.msra.gmra.mrb[36].mxu1 %vm186_vm2, %v1005_v8 }
0x1172   :  { %v1043_v9 = vpop.f32.mrb[36].mxu1 }
0x1173   :  { %v1044_v11 = vadd.f32 %v1428_v21, %v1043_v9  ;;  %v1278_v13 = vpop.f32.mrb[37].mxu1 }
0x1174   :  { %v1046_v14 = vpop.f32.mrb[38].mxu1 }
0x1175   :  { %v1049_v7 = vmul.f32 0.1, %v1044_v11  ;;  %v1279_v10 = vpop.f32.mrb[39].mxu1 }
0x1177   :  { %v1050_v12 = vadd.f32 %v1049_v7, %v959_v59 }
0x1179   :  { %1051 = vst.msk [vmem:[#allocation2] sm:$0xff] %vm128_vm1, %v1050_v12 }
0x117a   :  { %1317 = shalt.err (!%p1314_p4)
}
0x117b   :  { %s1318_s10 = scalar_lea.hbm %s1582_s6, 128 }
0x117c   :  { %p1319_p5 = scmp.ne.s32.totalorder %s1582_s6, %s1318_s10  ;;  %p1322_p6 = scmp.lt.u32.totalorder %s1318_s10, %s1582_s6 }
0x117e   :  { %p1324_p7 = pnand %p1322_p6, %p1319_p5 }
0x1180   :  { %1327 = shalt.err (!%p1324_p7)
}
0x1181   :  { %1061 = dma.vmem_to_hbm [thread:$0]  %s1059_s5, 128, %s1582_s6, [#allocation3]  }
0x1182   :  { %1328 = dma.done.wait [#allocation3], 128  }
0x1183   :  { %1329 = vsyncadd [#allocation3], 4294967168 }
0x1184   :  { %1065 = vsyncpa [#allocation3], 1 }

</bundles_post_ra>
